<compile_context>
chip_gen: v5e
topology: v5e:2x2
jax: 0.10.0
libtpu: 0.0.40
codegen_flags: <defaults>
</compile_context>

<pallas_src>
import jax
import jax.numpy as jnp
from jax.experimental import pallas as pl
from jax.experimental.pallas import tpu as pltpu

LANE = 128          # TPU lane width: weight output lanes padded to this
DEGREES = (0, 1)
N_SLABS = 4         # 1 component (degree 0) + 3 components (degree 1)


# ----------------------------- Pallas kernel ------------------------------- #

def _make_kernel(n, c_in, c_hid, tile_n):
    """Fused linear + interaction kernel for degrees 0 and 1.

    Packed weight slab layout (rows x 128 lanes):
      rows [0, c_in)                       : [wl0 | wl1] in lane cols [0, 2*c_hid)
      rows [c_in,          c_in +  c_hid)  : wn0  (lane cols [0, c_hid))
      rows [c_in +  c_hid, c_in + 2*c_hid) : ws0
      rows [c_in + 2c_hid, c_in + 3*c_hid) : wn1
      rows [c_in + 3c_hid, c_in + 4*c_hid) : ws1
    Bias slab (2, 128): row 0 = deg-0 linear bias, row 1 = deg-0 interaction bias.
    """

    def kernel(x_ref, adj_ref, w_ref, b_ref, o_ref):
        # Static slices of the packed slabs (zero-cost ref views -> small loads).
        wl0 = w_ref[0:c_in, 0:c_hid]
        wl1 = w_ref[0:c_in, c_hid:2 * c_hid]
        r = c_in
        wn0 = w_ref[r:r + c_hid, :]
        ws0 = w_ref[r + c_hid:r + 2 * c_hid, :]
        wn1 = w_ref[r + 2 * c_hid:r + 3 * c_hid, :]
        ws1 = w_ref[r + 3 * c_hid:r + 4 * c_hid, :]
        bl0 = b_ref[0:1, 0:c_hid]
        bi0 = b_ref[1:2, :]

        adj = adj_ref[...]                       # (tile_n, n) destination-row tile

        def self_rows(y_all, m):
            # Rows of y belonging to this destination tile (self term).  When the
            # tile covers the whole graph (toy sizes) it's just y_all: no recompute.
            if tile_n == n:
                return y_all
            row0 = pl.multiple_of(pl.program_id(0) * tile_n, tile_n)
            xt = x_ref[m, pl.ds(row0, tile_n), :]
            if m == 0:
                return jnp.dot(xt, wl0, preferred_element_type=jnp.float32) + bl0
            return jnp.dot(xt, wl1, preferred_element_type=jnp.float32)

        # ---- degree 0 (multiplicity 1): channel mix + bias, aggregate, mix ----
        y0 = jnp.dot(x_ref[0], wl0, preferred_element_type=jnp.float32) + bl0
        agg0 = jnp.dot(adj, y0, preferred_element_type=jnp.float32)
        o_ref[0] = (jnp.dot(agg0, wn0, preferred_element_type=jnp.float32)
                    + jnp.dot(self_rows(y0, 0), ws0,
                              preferred_element_type=jnp.float32)
                    + bi0)

        # ---- degree 1 (multiplicity 3): no bias (preserves equivariance) ----
        for m in range(1, N_SLABS):              # static loop over the 3 components
            y1 = jnp.dot(x_ref[m], wl1, preferred_element_type=jnp.float32)
            agg1 = jnp.dot(adj, y1, preferred_element_type=jnp.float32)
            o_ref[m] = (jnp.dot(agg1, wn1, preferred_element_type=jnp.float32)
                        + jnp.dot(self_rows(y1, m), ws1,
                                  preferred_element_type=jnp.float32))

    return kernel


# --------------------------- parameter packing ------------------------------ #

def _pack_params(params, c_in, c_hid):
    wl0 = params["linear"]["0"]["w"]
    wl1 = params["linear"]["1"]["w"]
    wn0 = params["interact"]["0"]["wn"]
    ws0 = params["interact"]["0"]["ws"]
    wn1 = params["interact"]["1"]["wn"]
    ws1 = params["interact"]["1"]["ws"]

    w_all = jnp.zeros((c_in + 4 * c_hid, LANE), jnp.float32)
    w_all = w_all.at[:c_in, :c_hid].set(wl0)
    w_all = w_all.at[:c_in, c_hid:2 * c_hid].set(wl1)
    r = c_in
    w_all = w_all.at[r:r + c_hid, :c_hid].set(wn0)
    w_all = w_all.at[r + c_hid:r + 2 * c_hid, :c_hid].set(ws0)
    w_all = w_all.at[r + 2 * c_hid:r + 3 * c_hid, :c_hid].set(wn1)
    w_all = w_all.at[r + 3 * c_hid:r + 4 * c_hid, :c_hid].set(ws1)

    b_all = jnp.zeros((2, LANE), jnp.float32)
    b_all = b_all.at[0, :c_hid].set(params["linear"]["0"]["b"][0])
    b_all = b_all.at[1, :c_hid].set(params["interact"]["0"]["b"][0])
    return w_all, b_all


# ------------------------------ Model wrapper ------------------------------ #

def init_params(key, c_in, c_hidden):
    ks = jax.random.split(key, 8)

    def w(k, shape, scale=0.1):
        return (scale * jax.random.normal(k, shape)).astype(jnp.float32)

    zeros_b = jnp.zeros((1, c_hidden), jnp.float32)
    return {
        "linear": {
            "0": {"w": w(ks[0], (c_in, c_hidden)), "b": w(ks[1], (1, c_hidden))},
            # no bias on degree-1 features (preserves equivariance)
            "1": {"w": w(ks[2], (c_in, c_hidden)), "b": zeros_b},
        },
        "interact": {
            "0": {"wn": w(ks[3], (c_hidden, c_hidden)),
                  "ws": w(ks[4], (c_hidden, c_hidden)),
                  "b": w(ks[5], (1, c_hidden))},
            "1": {"wn": w(ks[6], (c_hidden, c_hidden)),
                  "ws": w(ks[7], (c_hidden, c_hidden)),
                  "b": zeros_b},
        },
    }


@jax.jit
def model_forward(params, adj, node_feats):
    """node_feats: {"0": [1, N, C_in], "1": [3, N, C_in]} (layout [M, N, C])."""
    n = adj.shape[0]
    c_in = node_feats["0"].shape[-1]
    c_hid = params["linear"]["0"]["w"].shape[1]

    # Stack all (degree, component) slabs along a leading axis:
    # slab 0 = degree-0 scalar channel, slabs 1..3 = the three degree-1 components.
    x_all = jnp.concatenate([node_feats["0"], node_feats["1"]], axis=0)  # (4,N,C_in)
    w_all, b_all = _pack_params(params, c_in, c_hid)

    # Destination-node row tiling: grid of 1 at toy sizes; at large N streams the
    # adjacency rows HBM->VMEM and splits across v7x's two TensorCores.
    # TODO(synk): pick a padded/masked tile for N that is large and not a
    #             multiple of 128 (toy sizes take the tile_n == N path).
    tile_n = LANE if n % LANE == 0 else n
    grid = (pl.cdiv(n, tile_n),)

    est_bytes = 4 * 2 * (x_all.size + tile_n * n + w_all.size + b_all.size
                         + N_SLABS * tile_n * LANE)
    vmem_limit = int(min(32 * 2 ** 20, max(4 * 2 ** 20, 2 * est_bytes)))

    out = pl.pallas_call(
        _make_kernel(n, c_in, c_hid, tile_n),
        grid=grid,
        in_specs=[
            # all source-node features needed by every destination tile
            pl.BlockSpec((N_SLABS, n, c_in), lambda i: (0, 0, 0)),
            # adjacency: destination-row tile, all source columns
            pl.BlockSpec((tile_n, n), lambda i: (i, 0)),
            # packed weights / biases: fully resident (VMEM is the default space)
            pl.BlockSpec(w_all.shape, lambda i: (0, 0)),
            pl.BlockSpec(b_all.shape, lambda i: (0, 0)),
        ],
        out_specs=pl.BlockSpec((N_SLABS, tile_n, LANE), lambda i: (0, i, 0)),
        out_shape=jax.ShapeDtypeStruct((N_SLABS, n, LANE), jnp.float32),
        compiler_params=pltpu.CompilerParams(
            dimension_semantics=("parallel",),
            vmem_limit_bytes=vmem_limit),
    )(x_all, adj, w_all, b_all)

    # Slice the lane-dense output back to the per-degree dicts (fuses with XLA).
    return {"0": out[0:1, :, :c_hid], "1": out[1:4, :, :c_hid]}


def reference_forward(params, adj, node_feats):
    """Pure-JAX reference for correctness checking."""
    out = {}
    for d in DEGREES:
        pl_ = params["linear"][str(d)]
        y = jnp.einsum("mnc,cd->mnd", node_feats[str(d)], pl_["w"]) + pl_["b"]
        pi = params["interact"][str(d)]
        agg = jnp.einsum("nu,muc->mnc", adj, y)
        out[str(d)] = (jnp.einsum("mnc,cd->mnd", agg, pi["wn"])
                       + jnp.einsum("mnc,cd->mnd", y, pi["ws"])
                       + pi["b"])
    return out


# ----------------------------------- main ----------------------------------- #

if __name__ == "__main__":
    N_NODES = 8
    C_IN = 16
    C_HID = 32

    key = jax.random.PRNGKey(0)
    k_feat0, k_feat1, k_param = jax.random.split(key, 3)

    # DGL-style node data: node_feat_0 [N, C, 1], node_feat_1 [N, C, 3]
    node_feat_0 = jax.random.normal(k_feat0, (N_NODES, C_IN, 1), jnp.float32)
    node_feat_1 = jax.random.normal(k_feat1, (N_NODES, C_IN, 3), jnp.float32)

    # glue: transpose to kernel layout [M, N, C]
    node_feats = {
        "0": jnp.transpose(node_feat_0, (2, 0, 1)),
        "1": jnp.transpose(node_feat_1, (2, 0, 1)),
    }

    # Deterministic ring graph (undirected), dense adjacency A[dst, src] = 1.
    # TODO(synk): DGL uses a sparse edge list; dense adjacency is used since the
    #             node count in this test is tiny.
    src = jnp.arange(N_NODES)
    dst = (src + 1) % N_NODES
    adj = jnp.zeros((N_NODES, N_NODES), jnp.float32)
    adj = adj.at[dst, src].set(1.0).at[src, dst].set(1.0)

    params = init_params(k_param, C_IN, C_HID)

    out = model_forward(params, adj, node_feats)
    out = jax.tree_util.tree_map(jax.block_until_ready, out)

    ref = reference_forward(params, adj, node_feats)
    for d in DEGREES:
        assert out[str(d)].shape == ((2 * d + 1), N_NODES, C_HID)
        assert jnp.allclose(out[str(d)], ref[str(d)], atol=1e-4, rtol=1e-4)

    print("KERNEL_OK")
</pallas_src>

<mosaic_0001>
module attributes {stable_mosaic.version = 11 : i64} {
  func.func @kernel(%arg0: i32, %arg1: memref<4x8x16xf32, #tpu.memory_space<vmem>>, %arg2: memref<8x8xf32, #tpu.memory_space<vmem>>, %arg3: memref<144x128xf32, #tpu.memory_space<vmem>>, %arg4: memref<2x128xf32, #tpu.memory_space<vmem>>, %arg5: memref<4x8x128xf32, #tpu.memory_space<vmem>>) attributes {dimension_semantics = [#tpu.dimension_semantics<parallel>], iteration_bounds = array<i64: 1>, scalar_prefetch = 0 : i64, scratch_operands = 0 : i64, tpu.core_type = #tpu.core_type<tc>, window_params = [{pipeline_mode = #tpu.pipeline_mode<synchronous>, transform_indices = @transform_0, window_bounds = array<i64: 4, 8, 16>}, {transform_indices = @transform_1, window_bounds = array<i64: 8, 8>}, {pipeline_mode = #tpu.pipeline_mode<synchronous>, transform_indices = @transform_2, window_bounds = array<i64: 144, 128>}, {pipeline_mode = #tpu.pipeline_mode<synchronous>, transform_indices = @transform_3, window_bounds = array<i64: 2, 128>}, {transform_indices = @transform_4, window_bounds = array<i64: 4, 8, 128>}]} {
    %c0 = arith.constant 0 : index
    %c0_0 = arith.constant 0 : index
    %0 = vector.load %arg3[%c0, %c0_0] : memref<144x128xf32, #tpu.memory_space<vmem>>, vector<16x32xf32>
    %c0_1 = arith.constant 0 : index
    %c32 = arith.constant 32 : index
    %1 = vector.load %arg3[%c0_1, %c32] : memref<144x128xf32, #tpu.memory_space<vmem>>, vector<16x32xf32>
    %c16 = arith.constant 16 : index
    %c0_2 = arith.constant 0 : index
    %2 = vector.load %arg3[%c16, %c0_2] : memref<144x128xf32, #tpu.memory_space<vmem>>, vector<32x128xf32>
    %c48 = arith.constant 48 : index
    %c0_3 = arith.constant 0 : index
    %3 = vector.load %arg3[%c48, %c0_3] : memref<144x128xf32, #tpu.memory_space<vmem>>, vector<32x128xf32>
    %c80 = arith.constant 80 : index
    %c0_4 = arith.constant 0 : index
    %4 = vector.load %arg3[%c80, %c0_4] : memref<144x128xf32, #tpu.memory_space<vmem>>, vector<32x128xf32>
    %c112 = arith.constant 112 : index
    %c0_5 = arith.constant 0 : index
    %5 = vector.load %arg3[%c112, %c0_5] : memref<144x128xf32, #tpu.memory_space<vmem>>, vector<32x128xf32>
    %c0_6 = arith.constant 0 : index
    %c0_7 = arith.constant 0 : index
    %6 = vector.load %arg4[%c0_6, %c0_7] : memref<2x128xf32, #tpu.memory_space<vmem>>, vector<1x32xf32>
    %c1 = arith.constant 1 : index
    %c0_8 = arith.constant 0 : index
    %7 = vector.load %arg4[%c1, %c0_8] : memref<2x128xf32, #tpu.memory_space<vmem>>, vector<1x128xf32>
    %c0_9 = arith.constant 0 : index
    %c0_10 = arith.constant 0 : index
    %8 = vector.load %arg2[%c0_9, %c0_10] : memref<8x8xf32, #tpu.memory_space<vmem>>, vector<8x8xf32>
    %c0_11 = arith.constant 0 : index
    %c0_12 = arith.constant 0 : index
    %c0_13 = arith.constant 0 : index
    %9 = vector.load %arg1[%c0_11, %c0_12, %c0_13] : memref<4x8x16xf32, #tpu.memory_space<vmem>>, vector<1x8x16xf32>
    %10 = vector.shape_cast %9 : vector<1x8x16xf32> to vector<8x16xf32>
    %cst = arith.constant dense<0.000000e+00> : vector<8x32xf32>
    %11 = tpu.matmul %10, %0, %cst {dimension_numbers = #tpu.dot_dimension_numbers<[1], [0], [0], [1], [0, 0, 1, 1], [], []>} : vector<8x16xf32>, vector<16x32xf32>, vector<8x32xf32> -> vector<8x32xf32>
    %12 = vector.broadcast %6 : vector<1x32xf32> to vector<8x32xf32>
    %13 = arith.addf %11, %12 : vector<8x32xf32>
    %cst_14 = arith.constant dense<0.000000e+00> : vector<8x32xf32>
    %14 = tpu.matmul %8, %13, %cst_14 {dimension_numbers = #tpu.dot_dimension_numbers<[1], [0], [0], [1], [0, 0, 1, 1], [], []>} : vector<8x8xf32>, vector<8x32xf32>, vector<8x32xf32> -> vector<8x32xf32>
    %cst_15 = arith.constant dense<0.000000e+00> : vector<8x128xf32>
    %15 = tpu.matmul %14, %2, %cst_15 {dimension_numbers = #tpu.dot_dimension_numbers<[1], [0], [0], [1], [0, 0, 1, 1], [], []>} : vector<8x32xf32>, vector<32x128xf32>, vector<8x128xf32> -> vector<8x128xf32>
    %cst_16 = arith.constant dense<0.000000e+00> : vector<8x128xf32>
    %16 = tpu.matmul %13, %3, %cst_16 {dimension_numbers = #tpu.dot_dimension_numbers<[1], [0], [0], [1], [0, 0, 1, 1], [], []>} : vector<8x32xf32>, vector<32x128xf32>, vector<8x128xf32> -> vector<8x128xf32>
    %17 = arith.addf %15, %16 : vector<8x128xf32>
    %18 = vector.broadcast %7 : vector<1x128xf32> to vector<8x128xf32>
    %19 = arith.addf %17, %18 : vector<8x128xf32>
    %c0_17 = arith.constant 0 : index
    %c0_18 = arith.constant 0 : index
    %c0_19 = arith.constant 0 : index
    %20 = vector.load %arg5[%c0_17, %c0_18, %c0_19] : memref<4x8x128xf32, #tpu.memory_space<vmem>>, vector<1x8x128xf32>
    %21 = vector.shape_cast %20 : vector<1x8x128xf32> to vector<8x128xf32>
    %22 = vector.shape_cast %19 : vector<8x128xf32> to vector<1x8x128xf32>
    tpu.vector_store %arg5[%c0_17, %c0_18, %c0_19], %22 {strides = array<i32>} : memref<4x8x128xf32, #tpu.memory_space<vmem>>, vector<1x8x128xf32>,
    %c1_20 = arith.constant 1 : index
    %c0_21 = arith.constant 0 : index
    %c0_22 = arith.constant 0 : index
    %23 = vector.load %arg1[%c1_20, %c0_21, %c0_22] : memref<4x8x16xf32, #tpu.memory_space<vmem>>, vector<1x8x16xf32>
    %24 = vector.shape_cast %23 : vector<1x8x16xf32> to vector<8x16xf32>
    %cst_23 = arith.constant dense<0.000000e+00> : vector<8x32xf32>
    %25 = tpu.matmul %24, %1, %cst_23 {dimension_numbers = #tpu.dot_dimension_numbers<[1], [0], [0], [1], [0, 0, 1, 1], [], []>} : vector<8x16xf32>, vector<16x32xf32>, vector<8x32xf32> -> vector<8x32xf32>
    %cst_24 = arith.constant dense<0.000000e+00> : vector<8x32xf32>
    %26 = tpu.matmul %8, %25, %cst_24 {dimension_numbers = #tpu.dot_dimension_numbers<[1], [0], [0], [1], [0, 0, 1, 1], [], []>} : vector<8x8xf32>, vector<8x32xf32>, vector<8x32xf32> -> vector<8x32xf32>
    %cst_25 = arith.constant dense<0.000000e+00> : vector<8x128xf32>
    %27 = tpu.matmul %26, %4, %cst_25 {dimension_numbers = #tpu.dot_dimension_numbers<[1], [0], [0], [1], [0, 0, 1, 1], [], []>} : vector<8x32xf32>, vector<32x128xf32>, vector<8x128xf32> -> vector<8x128xf32>
    %cst_26 = arith.constant dense<0.000000e+00> : vector<8x128xf32>
    %28 = tpu.matmul %25, %5, %cst_26 {dimension_numbers = #tpu.dot_dimension_numbers<[1], [0], [0], [1], [0, 0, 1, 1], [], []>} : vector<8x32xf32>, vector<32x128xf32>, vector<8x128xf32> -> vector<8x128xf32>
    %29 = arith.addf %27, %28 : vector<8x128xf32>
    %c1_27 = arith.constant 1 : index
    %c0_28 = arith.constant 0 : index
    %c0_29 = arith.constant 0 : index
    %30 = vector.load %arg5[%c1_27, %c0_28, %c0_29] : memref<4x8x128xf32, #tpu.memory_space<vmem>>, vector<1x8x128xf32>
    %31 = vector.shape_cast %30 : vector<1x8x128xf32> to vector<8x128xf32>
    %32 = vector.shape_cast %29 : vector<8x128xf32> to vector<1x8x128xf32>
    tpu.vector_store %arg5[%c1_27, %c0_28, %c0_29], %32 {strides = array<i32>} : memref<4x8x128xf32, #tpu.memory_space<vmem>>, vector<1x8x128xf32>,
    %c2 = arith.constant 2 : index
    %c0_30 = arith.constant 0 : index
    %c0_31 = arith.constant 0 : index
    %33 = vector.load %arg1[%c2, %c0_30, %c0_31] : memref<4x8x16xf32, #tpu.memory_space<vmem>>, vector<1x8x16xf32>
    %34 = vector.shape_cast %33 : vector<1x8x16xf32> to vector<8x16xf32>
    %cst_32 = arith.constant dense<0.000000e+00> : vector<8x32xf32>
    %35 = tpu.matmul %34, %1, %cst_32 {dimension_numbers = #tpu.dot_dimension_numbers<[1], [0], [0], [1], [0, 0, 1, 1], [], []>} : vector<8x16xf32>, vector<16x32xf32>, vector<8x32xf32> -> vector<8x32xf32>
    %cst_33 = arith.constant dense<0.000000e+00> : vector<8x32xf32>
    %36 = tpu.matmul %8, %35, %cst_33 {dimension_numbers = #tpu.dot_dimension_numbers<[1], [0], [0], [1], [0, 0, 1, 1], [], []>} : vector<8x8xf32>, vector<8x32xf32>, vector<8x32xf32> -> vector<8x32xf32>
    %cst_34 = arith.constant dense<0.000000e+00> : vector<8x128xf32>
    %37 = tpu.matmul %36, %4, %cst_34 {dimension_numbers = #tpu.dot_dimension_numbers<[1], [0], [0], [1], [0, 0, 1, 1], [], []>} : vector<8x32xf32>, vector<32x128xf32>, vector<8x128xf32> -> vector<8x128xf32>
    %cst_35 = arith.constant dense<0.000000e+00> : vector<8x128xf32>
    %38 = tpu.matmul %35, %5, %cst_35 {dimension_numbers = #tpu.dot_dimension_numbers<[1], [0], [0], [1], [0, 0, 1, 1], [], []>} : vector<8x32xf32>, vector<32x128xf32>, vector<8x128xf32> -> vector<8x128xf32>
    %39 = arith.addf %37, %38 : vector<8x128xf32>
    %c2_36 = arith.constant 2 : index
    %c0_37 = arith.constant 0 : index
    %c0_38 = arith.constant 0 : index
    %40 = vector.load %arg5[%c2_36, %c0_37, %c0_38] : memref<4x8x128xf32, #tpu.memory_space<vmem>>, vector<1x8x128xf32>
    %41 = vector.shape_cast %40 : vector<1x8x128xf32> to vector<8x128xf32>
    %42 = vector.shape_cast %39 : vector<8x128xf32> to vector<1x8x128xf32>
    tpu.vector_store %arg5[%c2_36, %c0_37, %c0_38], %42 {strides = array<i32>} : memref<4x8x128xf32, #tpu.memory_space<vmem>>, vector<1x8x128xf32>,
    %c3 = arith.constant 3 : index
    %c0_39 = arith.constant 0 : index
    %c0_40 = arith.constant 0 : index
    %43 = vector.load %arg1[%c3, %c0_39, %c0_40] : memref<4x8x16xf32, #tpu.memory_space<vmem>>, vector<1x8x16xf32>
    %44 = vector.shape_cast %43 : vector<1x8x16xf32> to vector<8x16xf32>
    %cst_41 = arith.constant dense<0.000000e+00> : vector<8x32xf32>
    %45 = tpu.matmul %44, %1, %cst_41 {dimension_numbers = #tpu.dot_dimension_numbers<[1], [0], [0], [1], [0, 0, 1, 1], [], []>} : vector<8x16xf32>, vector<16x32xf32>, vector<8x32xf32> -> vector<8x32xf32>
    %cst_42 = arith.constant dense<0.000000e+00> : vector<8x32xf32>
    %46 = tpu.matmul %8, %45, %cst_42 {dimension_numbers = #tpu.dot_dimension_numbers<[1], [0], [0], [1], [0, 0, 1, 1], [], []>} : vector<8x8xf32>, vector<8x32xf32>, vector<8x32xf32> -> vector<8x32xf32>
    %cst_43 = arith.constant dense<0.000000e+00> : vector<8x128xf32>
    %47 = tpu.matmul %46, %4, %cst_43 {dimension_numbers = #tpu.dot_dimension_numbers<[1], [0], [0], [1], [0, 0, 1, 1], [], []>} : vector<8x32xf32>, vector<32x128xf32>, vector<8x128xf32> -> vector<8x128xf32>
    %cst_44 = arith.constant dense<0.000000e+00> : vector<8x128xf32>
    %48 = tpu.matmul %45, %5, %cst_44 {dimension_numbers = #tpu.dot_dimension_numbers<[1], [0], [0], [1], [0, 0, 1, 1], [], []>} : vector<8x32xf32>, vector<32x128xf32>, vector<8x128xf32> -> vector<8x128xf32>
    %49 = arith.addf %47, %48 : vector<8x128xf32>
    %c3_45 = arith.constant 3 : index
    %c0_46 = arith.constant 0 : index
    %c0_47 = arith.constant 0 : index
    %50 = vector.load %arg5[%c3_45, %c0_46, %c0_47] : memref<4x8x128xf32, #tpu.memory_space<vmem>>, vector<1x8x128xf32>
    %51 = vector.shape_cast %50 : vector<1x8x128xf32> to vector<8x128xf32>
    %52 = vector.shape_cast %49 : vector<8x128xf32> to vector<1x8x128xf32>
    tpu.vector_store %arg5[%c3_45, %c0_46, %c0_47], %52 {strides = array<i32>} : memref<4x8x128xf32, #tpu.memory_space<vmem>>, vector<1x8x128xf32>,
    return
  }
  func.func @transform_0(%arg0: i32) -> (i32, i32, i32) {
    %c0_i32 = arith.constant 0 : i32
    %c0_i32_0 = arith.constant 0 : i32
    %c0_i32_1 = arith.constant 0 : i32
    %c0_i32_2 = arith.constant 0 : i32
    return %c0_i32, %c0_i32_0, %c0_i32_1 : i32, i32, i32
  }
  func.func @transform_1(%arg0: i32) -> (i32, i32) {
    %c0_i32 = arith.constant 0 : i32
    %c0_i32_0 = arith.constant 0 : i32
    return %arg0, %c0_i32 : i32, i32
  }
  func.func @transform_2(%arg0: i32) -> (i32, i32) {
    %c0_i32 = arith.constant 0 : i32
    %c0_i32_0 = arith.constant 0 : i32
    %c0_i32_1 = arith.constant 0 : i32
    return %c0_i32, %c0_i32_0 : i32, i32
  }
  func.func @transform_3(%arg0: i32) -> (i32, i32) {
    %c0_i32 = arith.constant 0 : i32
    %c0_i32_0 = arith.constant 0 : i32
    %c0_i32_1 = arith.constant 0 : i32
    return %c0_i32, %c0_i32_0 : i32, i32
  }
  func.func @transform_4(%arg0: i32) -> (i32, i32, i32) {
    %c0_i32 = arith.constant 0 : i32
    %c0_i32_0 = arith.constant 0 : i32
    %c0_i32_1 = arith.constant 0 : i32
    return %c0_i32, %arg0, %c0_i32_0 : i32, i32, i32
  }
}

</mosaic_0001>

<bundles_post_ra>
// kernel: model_forward.1
= control target key start
LH: loop header
LB: loop body
LE: loop exit
PB: predicated region body
PF: predicated region fallthrough
CT: control target
= control target key end

     0   :  { %vm40_vm0 = vcmask 130048   ;;  %s459_s25 = smov 96   ;;  %vm88_vm1 = vcmask 261120   ;;  %vm64_vm2 = vcmask 64512   ;;  %s588_s2 = inlined_call_operand.vmem [shape: f32[144,128], index: 2, kind: input, shape index: {}]   ;;  %s589_s0 = inlined_call_operand.vmem [shape: f32[4,8,16], index: 0, kind: input, shape index: {}]   ;;  %s590_s3 = inlined_call_operand.vmem [shape: f32[2,128], index: 3, kind: input, shape index: {}]   ;;  %s591_s1 = inlined_call_operand.vmem [shape: f32[8,8], index: 1, kind: input, shape index: {}]   ;;  %s592_s4 = inlined_call_operand.vmem [shape: f32[4,8,128], index: 4, kind: output, shape index: {}]  }
   0x1   :  { %v18_v0 = vld [vmem:[%s588_s2 + $0x8] sm:$0xff]  ;;  %v17_v1 = vld [vmem:[%s588_s2] sm:$0xff]  ;;  %v24_v6 = vld [vmem:[%s588_s2 + $0x38] sm:$0xff] }
   0x2   :  { %v38_v2 = vld [vmem:[%s589_s0] sm:$0xff]  ;;  %58 = vmatpush.msra.mxu0 %v18_v0  ;;  %v452_v3 = vpack.i.bf16 %v17_v1, %v18_v0  ;;  %v26_v4 = vld [vmem:[%s588_s2 + $0x48] sm:$0xff]  ;;  %v23_v7 = vld [vmem:[%s588_s2 + $0x30] sm:$0xff] }
   0x3   :  { %v25_v5 = vld [vmem:[%s588_s2 + $0x40] sm:$0xff]  ;;  %104 = vmatpush.msra.mxu2 %v26_v4  ;;  %v22_v8 = vld [vmem:[%s588_s2 + $0x28] sm:$0xff]  ;;  %v20_v12 = vld [vmem:[%s588_s2 + $0x18] sm:$0xff] }
   0x4   :  { %59 = vmatpush.msra.mxu0 %v17_v1  ;;  %453 = vrot.lane.b32.xlu0 %v452_v3, %s459_s25  ;;  %v21_v9 = vld [vmem:[%s588_s2 + $0x20] sm:$0xff]  ;;  %v433_v18 = vld [vmem:[%s589_s0 + $0x8] sm:$0xff]  ;;  %v439_v19 = vld [vmem:[%s589_s0 + $0x10] sm:$0xff] }
   0x5   :  { %429 = vmatmul.msk.f32.vlgmr.msra.gmra.mxu0 %vm40_vm0, %v38_v2  ;;  %105 = vmatpush.msra.mxu2 %v25_v5  ;;  %v457_v10 = vld [vmem:[%s590_s3] ss:$0 sm:$0xff]  ;;  %v445_v20 = vld [vmem:[%s589_s0 + $0x18] sm:$0xff]  ;;  %v19_v21 = vld [vmem:[%s588_s2 + $0x10] sm:$0xff] }
   0x6   :  { %127 = vmatpush.msra.mxu3 %v22_v8  ;;  %v37_v16 = vld [vmem:[%s591_s1] sm:$0xff]  ;;  %v34_v22 = vld [vmem:[%s588_s2 + $0x88] sm:$0xff]  ;;  %v32_v24 = vld [vmem:[%s588_s2 + $0x78] sm:$0xff] }
   0x7   :  { %106 = vmatpush.msra.mxu2 %v24_v6  ;;  %v33_v23 = vld [vmem:[%s588_s2 + $0x80] sm:$0xff]  ;;  %v31_v25 = vld [vmem:[%s588_s2 + $0x70] sm:$0xff]  ;;  %v30_v26 = vld [vmem:[%s588_s2 + $0x68] sm:$0xff] }
   0x8   :  { %128 = vmatpush.msra.mxu3 %v21_v9  ;;  %v29_v27 = vld [vmem:[%s588_s2 + $0x60] sm:$0xff]  ;;  %v28_v32 = vld [vmem:[%s588_s2 + $0x58] sm:$0xff]  ;;  %v27_v33 = vld [vmem:[%s588_s2 + $0x50] sm:$0xff] }
   0x9   :  { %107 = vmatpush.msra.mxu2 %v23_v7  ;;  %v458_v34 = vld [vmem:[%s590_s3 + $0x1] ss:$0 sm:$0xff] }
   0xa   :  { %129 = vmatpush.msra.mxu3 %v20_v12 }
   0xb   :  { %206 = vmatpush.msrb.mxu2 %v34_v22 }
   0xc   :  { %130 = vmatpush.msra.mxu3 %v19_v21 }
   0xd   :  { %207 = vmatpush.msrb.mxu2 %v33_v23 }
   0xe   :  { %229 = vmatpush.msrb.mxu3 %v30_v26 }
   0xf   :  { %208 = vmatpush.msrb.mxu2 %v32_v24 }
  0x10   :  { %230 = vmatpush.msrb.mxu3 %v29_v27 }
  0x11   :  { %209 = vmatpush.msrb.mxu2 %v31_v25 }
  0x12   :  { %231 = vmatpush.msrb.mxu3 %v28_v32 }
  0x14   :  { %232 = vmatpush.msrb.mxu3 %v27_v33 }
  0x76   :  { %v454_v11 = vpop.permute.xlu0 %453 }
  0x77   :  { %v455_v15 = vunpack.i.l.bf16 %v454_v11  ;;  %v456_v17 = vunpack.i.h.bf16 %v454_v11 }
  0x82   :  { %v61_v13 = vpop.f32.mrf.mxu0 }
  0x83   :  { %v62_v14 = vadd.f32 %v457_v10, %v61_v13 }
  0x85   :  { %83 = vmatpush.msra.mxu1 %v62_v14  ;;  %431 = vmatmul.msk.f32.vlgmr.msra.gmra.mxu2 %vm88_vm1, %v62_v14 }
  0x86   :  { %430 = vmatmul.msk.f32.vlgmr.msra.gmra.mxu1 %vm64_vm2, %v37_v16  ;;  %299 = vmatpush.msra.mxu2 %v34_v22 }
  0x87   :  { %165 = vmatpush.msrb.mxu1 %v455_v15 }
  0x88   :  { %300 = vmatpush.msra.mxu2 %v33_v23 }
  0x89   :  { %166 = vmatpush.msrb.mxu1 %v456_v17 }
  0x8a   :  { %301 = vmatpush.msra.mxu2 %v32_v24 }
  0x8b   :  { %258 = vmatpush.msra.mxu1 %v455_v15 }
  0x8c   :  { %302 = vmatpush.msra.mxu2 %v31_v25 }
  0x8d   :  { %259 = vmatpush.msra.mxu1 %v456_v17 }
  0x8e   :  { %434 = vmatmul.msk.f32.vlgmr.msrb.gmra.mxu1 %vm40_vm0, %v433_v18 }
  0x8f   :  { %351 = vmatpush.msrb.mxu1 %v455_v15 }
  0x91   :  { %352 = vmatpush.msrb.mxu1 %v456_v17 }
  0x96   :  { %440 = vmatmul.msk.f32.vlgmr.msra.gmra.mxu1 %vm40_vm0, %v439_v19 }
  0x9e   :  { %446 = vmatmul.msk.f32.vlgmr.msrb.gmra.mxu1 %vm40_vm0, %v445_v20 }
 0x103   :  { %v85_v28 = vpop.f32.mrf.mxu1 }
 0x104   :  { %432 = vmatmul.msk.f32.vlgmr.msra.gmra.mxu3 %vm88_vm1, %v85_v28 }
 0x105   :  { %322 = vmatpush.msra.mxu3 %v30_v26 }
 0x107   :  { %323 = vmatpush.msra.mxu3 %v29_v27 }
 0x108   :  { %v109_v35 = vpop.f32.mrf.mxu2 }
 0x109   :  { %324 = vmatpush.msra.mxu3 %v28_v32 }
 0x10b   :  { %v168_v29 = vpop.f32.mrf.mxu1  ;;  %325 = vmatpush.msra.mxu3 %v27_v33 }
 0x10c   :  { %186 = vmatpush.msrb.mxu0 %v168_v29  ;;  %436 = vmatmul.msk.f32.vlgmr.msrb.gmra.mxu2 %vm88_vm1, %v168_v29 }
 0x10d   :  { %435 = vmatmul.msk.f32.vlgmr.msrb.gmra.mxu0 %vm64_vm2, %v37_v16  ;;  %392 = vmatpush.msrb.mxu2 %v34_v22 }
 0x10f   :  { %393 = vmatpush.msrb.mxu2 %v33_v23 }
 0x111   :  { %394 = vmatpush.msrb.mxu2 %v32_v24 }
 0x113   :  { %v261_v30 = vpop.f32.mrf.mxu1  ;;  %395 = vmatpush.msrb.mxu2 %v31_v25 }
 0x114   :  { %279 = vmatpush.msra.mxu0 %v261_v30  ;;  %442 = vmatmul.msk.f32.vlgmr.msra.gmra.mxu2 %vm88_vm1, %v261_v30 }
 0x115   :  { %441 = vmatmul.msk.f32.vlgmr.msra.gmra.mxu0 %vm64_vm2, %v37_v16 }
 0x11b   :  { %v354_v31 = vpop.f32.mrf.mxu1 }
 0x11c   :  { %372 = vmatpush.msrb.mxu0 %v354_v31  ;;  %448 = vmatmul.msk.f32.vlgmr.msrb.gmra.mxu2 %vm88_vm1, %v354_v31 }
 0x11d   :  { %447 = vmatmul.msk.f32.vlgmr.msrb.gmra.mxu0 %vm64_vm2, %v37_v16 }
 0x187   :  { %v132_v36 = vpop.f32.mrf.mxu3 }
 0x188   :  { %v133_v37 = vadd.f32 %v132_v36, %v109_v35 }
 0x18a   :  { %v136_v38 = vadd.f32 %v458_v34, %v133_v37  ;;  %v188_v39 = vpop.f32.mrf.mxu0 }
 0x18b   :  { %437 = vmatmul.msk.f32.vlgmr.msrb.gmra.mxu3 %vm88_vm1, %v188_v39 }
 0x18c   :  { %137 = vst [vmem:[%s592_s4] sm:$0xff] %v136_v38  ;;  %415 = vmatpush.msrb.mxu3 %v30_v26 }
 0x18e   :  { %416 = vmatpush.msrb.mxu3 %v29_v27 }
 0x18f   :  { %v211_v42 = vpop.f32.mrf.mxu2 }
 0x190   :  { %417 = vmatpush.msrb.mxu3 %v28_v32 }
 0x192   :  { %v281_v40 = vpop.f32.mrf.mxu0  ;;  %418 = vmatpush.msrb.mxu3 %v27_v33 }
 0x193   :  { %443 = vmatmul.msk.f32.vlgmr.msra.gmra.mxu3 %vm88_vm1, %v281_v40 }
 0x197   :  { %v304_v45 = vpop.f32.mrf.mxu2 }
 0x19a   :  { %v374_v41 = vpop.f32.mrf.mxu0 }
 0x19b   :  { %449 = vmatmul.msk.f32.vlgmr.msrb.gmra.mxu3 %vm88_vm1, %v374_v41 }
 0x19f   :  { %v397_v48 = vpop.f32.mrf.mxu2 }
 0x20e   :  { %v234_v43 = vpop.f32.mrf.mxu3 }
 0x20f   :  { %v235_v44 = vadd.f32 %v234_v43, %v211_v42 }
 0x211   :  { %438 = vst [vmem:[%s592_s4 + $0x8] sm:$0xff] %v235_v44 }
 0x216   :  { %v327_v46 = vpop.f32.mrf.mxu3 }
 0x217   :  { %v328_v47 = vadd.f32 %v327_v46, %v304_v45 }
 0x219   :  { %444 = vst [vmem:[%s592_s4 + $0x10] sm:$0xff] %v328_v47 }
 0x21e   :  { %v420_v49 = vpop.f32.mrf.mxu3 }
 0x21f   :  { %v421_v50 = vadd.f32 %v420_v49, %v397_v48 }
 0x221   :  { %450 = vst [vmem:[%s592_s4 + $0x18] sm:$0xff] %v421_v50 }

</bundles_post_ra>
